<compile_context>
chip_gen: v7x
topology: tpu7x:2x2x1
jax: 0.10.0
libtpu: 0.0.40
codegen_flags: <defaults>
</compile_context>

<pallas_src>
import functools

import jax
import jax.numpy as jnp
from jax.experimental import pallas as pl
from jax.experimental.pallas import tpu as pltpu


# ---------------------------------------------------------------------------
# Kernels
# ---------------------------------------------------------------------------
def gc_fused_kernel(x_ref, wm_ref, w1t_ref, b1_ref, g_ref, be_ref, w2t_ref,
                    b2_ref, o_ref, *, hw_valid, compute_dtype):
    """One batch-block step: attention logits -> softmax -> context pooling ->
    channel-add branch (conv1x1, LayerNorm, ReLU, conv1x1) -> residual add."""
    x = x_ref[...].astype(compute_dtype)                   # (Bb, C, HWp)
    wm = wm_ref[...].astype(compute_dtype)                  # (C, 1)

    # conv_mask (1x1 conv C->1) as a VPU multiply + sublane reduce (f32 accumulation).
    # NOTE: the conv_mask bias is a constant logit shift -> no effect after softmax.
    logits = jnp.sum(x * wm[None, :, :], axis=1, dtype=jnp.float32)   # (Bb, HWp)
    if hw_valid != x.shape[-1]:                              # mask padded lanes
        lane = jax.lax.broadcasted_iota(jnp.int32, logits.shape, 1)
        logits = jnp.where(lane < hw_valid, logits, -jnp.inf)

    # softmax over spatial; normalization folded into the pooled context
    m = jnp.max(logits, axis=-1, keepdims=True)
    e = jnp.exp(logits - m)                                  # (Bb, HWp) f32
    s = jnp.sum(e, axis=-1, keepdims=True)                   # (Bb, 1)

    ctx = jnp.sum(x * e.astype(compute_dtype)[:, None, :], axis=-1,
                  dtype=jnp.float32)                         # (Bb, C)
    ctx = ctx * pl.reciprocal(s, approx=False)               # exact: keeps ref accuracy

    # channel_add_conv: conv1x1 -> LayerNorm([C/2,1,1]) -> ReLU -> conv1x1
    w1t = w1t_ref[...]
    h = jnp.dot(ctx.astype(w1t.dtype), w1t,
                preferred_element_type=jnp.float32) + b1_ref[...]     # (Bb, Ch)
    mu = jnp.mean(h, axis=-1, keepdims=True)
    var = jnp.mean((h - mu) ** 2, axis=-1, keepdims=True)
    hn = (h - mu) * jax.lax.rsqrt(var + 1e-5) * g_ref[...] + be_ref[...]
    hn = jnp.maximum(hn, 0.0)
    w2t = w2t_ref[...]
    y = jnp.dot(hn.astype(w2t.dtype), w2t,
                preferred_element_type=jnp.float32) + b2_ref[...]     # (Bb, C)

    # residual broadcast-add; single fused add-then-store pass (v5e vst-slot friendly)
    o_ref[...] = (x + y.astype(compute_dtype)[:, :, None]).astype(o_ref.dtype)


def gc_ctx_kernel(x_ref, wm_ref, w1t_ref, b1_ref, g_ref, be_ref, w2t_ref,
                  b2_ref, y_ref, m_sc, s_sc, ctx_sc, *,
                  hw_valid, hw_tile, total_lanes, compute_dtype):
    """HW-tiled online-softmax context pass: emits y (channel-add output) per sample."""
    k = pl.program_id(1)

    @pl.when(k == 0)
    def _():
        m_sc[...] = jnp.full_like(m_sc, -jnp.inf)
        s_sc[...] = jnp.zeros_like(s_sc)
        ctx_sc[...] = jnp.zeros_like(ctx_sc)

    x = x_ref[...].astype(compute_dtype)                     # (1, C, hw_tile)
    wm = wm_ref[...].astype(compute_dtype)

    logits = jnp.sum(x * wm[None, :, :], axis=1, dtype=jnp.float32)   # (1, hw_tile)
    if hw_valid != total_lanes:
        lane = jax.lax.broadcasted_iota(jnp.int32, logits.shape, 1) + k * hw_tile
        logits = jnp.where(lane < hw_valid, logits, -jnp.inf)

    m_prev = m_sc[...]                                       # (1, 1)
    m_new = jnp.maximum(m_prev, jnp.max(logits, axis=-1, keepdims=True))
    alpha = jnp.exp(m_prev - m_new)
    e = jnp.exp(logits - m_new)
    s_sc[...] = alpha * s_sc[...] + jnp.sum(e, axis=-1, keepdims=True)
    ctx_sc[...] = alpha * ctx_sc[...] + jnp.sum(
        x * e.astype(compute_dtype)[:, None, :], axis=-1, dtype=jnp.float32)
    m_sc[...] = m_new

    @pl.when(k == pl.num_programs(1) - 1)
    def _():
        ctx = ctx_sc[...] * pl.reciprocal(s_sc[...], approx=False)    # (1, C)
        w1t = w1t_ref[...]
        h = jnp.dot(ctx.astype(w1t.dtype), w1t,
                    preferred_element_type=jnp.float32) + b1_ref[...]
        mu = jnp.mean(h, axis=-1, keepdims=True)
        var = jnp.mean((h - mu) ** 2, axis=-1, keepdims=True)
        hn = (h - mu) * jax.lax.rsqrt(var + 1e-5) * g_ref[...] + be_ref[...]
        hn = jnp.maximum(hn, 0.0)
        w2t = w2t_ref[...]
        y = jnp.dot(hn.astype(w2t.dtype), w2t,
                    preferred_element_type=jnp.float32) + b2_ref[...]  # (1, C)
        y_ref[...] = y[:, :, None].astype(y_ref.dtype)        # (1, C, 1)


def gc_residual_kernel(x_ref, y_ref, o_ref):
    """Streaming residual broadcast-add for the HW-tiled path."""
    x = x_ref[...]
    o_ref[...] = (x + y_ref[...].astype(x.dtype)).astype(o_ref.dtype)


# ---------------------------------------------------------------------------
# Wrapper helpers
# ---------------------------------------------------------------------------
def _vmem_limit_bytes():
    phys = 128 * 1024 * 1024
    try:
        phys = int(pltpu.get_tpu_info().vmem_capacity_bytes)
    except Exception:
        pass
    # Scoped limit: half of physical, capped at 64 MiB (=> 64 MiB v5e/v6e, 32 MiB v7x).
    return int(min(64 * 1024 * 1024, max(phys // 2, 16 * 1024 * 1024)))


def _elementwise_dtype(x_dtype):
    """Keep the big elementwise passes in bf16 only on chips with a bf16 VPU (v6e/v7x)."""
    if x_dtype != jnp.bfloat16:
        return jnp.float32
    try:
        kind = jax.devices()[0].device_kind.lower()
    except Exception:
        kind = ""
    if any(t in kind for t in ("v2", "v3", "v4", "v5 lite", "v5lite", "v5e")):
        return jnp.float32            # no bf16 VALU/EUP on these generations
    return jnp.bfloat16


def _prep_params(p, C, weight_dtype):
    """Per-level parameters in kernel-friendly (lane-major) layouts."""
    Ch = C // 2
    f32 = jnp.float32
    return {
        "wm": p["wm"].reshape(C, 1).astype(f32),      # conv_mask weight (bias is a no-op)
        "w1t": p["w1"].T.astype(weight_dtype),        # (C, Ch)
        "b1": p["b1"].reshape(1, Ch).astype(f32),
        "gamma": p["gamma"].reshape(1, Ch).astype(f32),
        "beta": p["beta"].reshape(1, Ch).astype(f32),
        "w2t": p["w2"].T.astype(weight_dtype),        # (Ch, C)
        "b2": p["b2"].reshape(1, C).astype(f32),
    }


def _param_bytes(kp):
    return sum(int(v.size) * int(v.dtype.itemsize) for v in kp.values())


def _pick_batch_block(B, C, HWp, itemsize, vmem_limit, param_bytes):
    """Largest divisor of B whose (Bb, C, HWp) block fits a ~limit/5 budget
    (2x double-buffered input + 2x output + in-kernel temporaries + params)."""
    budget = max(512 * 1024, (vmem_limit - 2 * param_bytes) // 5)
    per_sample = C * HWp * itemsize
    if per_sample > budget:
        return 0                                      # -> HW-tiled fallback path
    bb = max(1, min(B, budget // per_sample))
    while B % bb:
        bb -= 1
    return bb


def _pick_hw_tile(C, HWp, itemsize, vmem_limit, param_bytes):
    """Largest multiple-of-128 divisor of HWp whose (1, C, tile) block fits the budget."""
    budget = max(256 * 1024, (vmem_limit - 2 * param_bytes) // 5)
    best = 128
    t = 128
    while t <= HWp:
        if HWp % t == 0 and C * t * itemsize <= budget:
            best = t
        t += 128
    return best


# ---------------------------------------------------------------------------
# pallas_call wrappers
# ---------------------------------------------------------------------------
def _gc_fused_call(x2, kp, hw_valid, Bb, vmem_limit, compute_dtype, donate_x):
    B, C, HWp = x2.shape
    Ch = C // 2
    kernel = functools.partial(gc_fused_kernel, hw_valid=hw_valid,
                               compute_dtype=compute_dtype)

    def const(shape):
        return pl.BlockSpec(shape, lambda b: (0,) * len(shape))

    return pl.pallas_call(
        kernel,
        out_shape=jax.ShapeDtypeStruct((B, C, HWp), x2.dtype),
        grid_spec=pltpu.PrefetchScalarGridSpec(
            num_scalar_prefetch=0,
            grid=(B // Bb,),
            in_specs=[
                pl.BlockSpec((Bb, C, HWp), lambda b: (b, 0, 0)),   # x
                const((C, 1)),                                      # conv_mask weight
                const((C, Ch)),                                     # conv1 weight^T
                const((1, Ch)),                                     # conv1 bias
                const((1, Ch)),                                     # LN gamma
                const((1, Ch)),                                     # LN beta
                const((Ch, C)),                                     # conv2 weight^T
                const((1, C)),                                      # conv2 bias
            ],
            out_specs=pl.BlockSpec((Bb, C, HWp), lambda b: (b, 0, 0)),
        ),
        compiler_params=pltpu.CompilerParams(
            dimension_semantics=("parallel",),
            vmem_limit_bytes=vmem_limit,
        ),
        input_output_aliases=({0: 0} if donate_x else {}),
    )(x2, kp["wm"], kp["w1t"], kp["b1"], kp["gamma"], kp["beta"],
      kp["w2t"], kp["b2"])


def _gc_tiled_call(x2, kp, hw_valid, vmem_limit, compute_dtype, hw_tile):
    """Fallback for levels whose (C, HW) slab exceeds the VMEM budget at Bb=1."""
    B, C, HWp = x2.shape
    Ch = C // 2
    assert HWp % hw_tile == 0
    n_hw = HWp // hw_tile

    def const(shape):
        return pl.BlockSpec(shape, lambda b, k: (0,) * len(shape))

    ctx_kernel = functools.partial(
        gc_ctx_kernel, hw_valid=hw_valid, hw_tile=hw_tile,
        total_lanes=HWp, compute_dtype=compute_dtype)

    y = pl.pallas_call(
        ctx_kernel,
        out_shape=jax.ShapeDtypeStruct((B, C, 1), jnp.float32),
        grid_spec=pltpu.PrefetchScalarGridSpec(
            num_scalar_prefetch=0,
            grid=(B, n_hw),
            in_specs=[
                pl.BlockSpec((1, C, hw_tile), lambda b, k: (b, 0, k)),
                const((C, 1)),
                const((C, Ch)), const((1, Ch)), const((1, Ch)), const((1, Ch)),
                const((Ch, C)), const((1, C)),
            ],
            out_specs=pl.BlockSpec((1, C, 1), lambda b, k: (b, 0, 0)),
            scratch_shapes=[
                pltpu.VMEM((1, 1), jnp.float32),     # running max
                pltpu.VMEM((1, 1), jnp.float32),     # running sum(e)
                pltpu.VMEM((1, C), jnp.float32),     # running (unnormalized) context
            ],
        ),
        compiler_params=pltpu.CompilerParams(
            dimension_semantics=("parallel", "arbitrary"),
            vmem_limit_bytes=vmem_limit,
        ),
    )(x2, kp["wm"], kp["w1t"], kp["b1"], kp["gamma"], kp["beta"],
      kp["w2t"], kp["b2"])

    # Second streaming pass: residual broadcast-add (x re-read once from HBM).
    # TODO(synk): this pass could use a larger, batch-blocked tile than the ctx pass.
    return pl.pallas_call(
        gc_residual_kernel,
        out_shape=jax.ShapeDtypeStruct((B, C, HWp), x2.dtype),
        grid_spec=pltpu.PrefetchScalarGridSpec(
            num_scalar_prefetch=0,
            grid=(B, n_hw),
            in_specs=[
                pl.BlockSpec((1, C, hw_tile), lambda b, k: (b, 0, k)),
                pl.BlockSpec((1, C, 1), lambda b, k: (b, 0, 0)),
            ],
            out_specs=pl.BlockSpec((1, C, hw_tile), lambda b, k: (b, 0, k)),
        ),
        compiler_params=pltpu.CompilerParams(
            dimension_semantics=("parallel", "parallel"),
            vmem_limit_bytes=vmem_limit,
        ),
    )(x2, y)


# ---------------------------------------------------------------------------
# Public forward
# ---------------------------------------------------------------------------
def gc_apply_single(fm, p, *, donate_x=False, force_hw_tile=None):
    """Apply one GC block (conv_mask softmax pooling + channel_add_conv + residual)
    to a single (B, C, H, W) feature map."""
    B, C, H, W = fm.shape
    HW = H * W
    compute_dtype = _elementwise_dtype(fm.dtype)
    weight_dtype = jnp.bfloat16 if compute_dtype == jnp.bfloat16 else jnp.float32
    vmem_limit = _vmem_limit_bytes()

    # lane-pad the flattened spatial axis to a multiple of 128 (masked in-kernel)
    HWp = -(-HW // 128) * 128
    x2 = fm.reshape(B, C, HW)
    if HWp != HW:
        x2 = jnp.pad(x2, ((0, 0), (0, 0), (0, HWp - HW)))

    kp = _prep_params(p, C, weight_dtype)
    pbytes = _param_bytes(kp)
    itemsize = int(x2.dtype.itemsize)

    Bb = 0 if force_hw_tile is not None else _pick_batch_block(
        B, C, HWp, itemsize, vmem_limit, pbytes)
    if Bb > 0:
        out = _gc_fused_call(x2, kp, HW, Bb, vmem_limit, compute_dtype, donate_x)
    else:
        hw_tile = force_hw_tile or _pick_hw_tile(C, HWp, itemsize, vmem_limit, pbytes)
        out = _gc_tiled_call(x2, kp, HW, vmem_limit, compute_dtype, hw_tile)

    if HWp != HW:
        out = out[..., :HW]
    return out.reshape(B, C, H, W)


def gc_block_forward(student_fm, teacher_fm, params_s, params_t, *, donate_x=False):
    """Mirrors GcBlock.forward: returns (student_gb, teacher_gb) lists."""
    student_gb, teacher_gb = [], []
    for i in range(len(teacher_fm)):
        student_gb.append(gc_apply_single(student_fm[i], params_s[i], donate_x=donate_x))
        teacher_gb.append(gc_apply_single(teacher_fm[i], params_t[i], donate_x=donate_x))
    return student_gb, teacher_gb


# ---------------------------------------------------------------------------
# Deterministic parameter init (1x1 convs stored as dense matrices)
# ---------------------------------------------------------------------------
def init_level_params(key, C):
    Ch = C // 2
    ks = jax.random.split(key, 6)
    return {
        "wm": jax.random.normal(ks[0], (C,), jnp.float32) * 0.1,     # conv_mask weight
        "bm": jax.random.normal(ks[1], (), jnp.float32) * 0.1,       # conv_mask bias
        "w1": jax.random.normal(ks[2], (Ch, C), jnp.float32) * 0.1,  # conv C -> Ch
        "b1": jax.random.normal(ks[3], (Ch,), jnp.float32) * 0.1,
        "gamma": jnp.ones((Ch,), jnp.float32),                       # LayerNorm affine
        "beta": jnp.zeros((Ch,), jnp.float32),
        "w2": jax.random.normal(ks[4], (C, Ch), jnp.float32) * 0.1,  # conv Ch -> C
        "b2": jax.random.normal(ks[5], (C,), jnp.float32) * 0.1,
    }


# ---------------------------------------------------------------------------
# Pure-JAX reference (correctness check only)
# ---------------------------------------------------------------------------
def gc_ref_single(x, p):
    B, C, H, W = x.shape
    x2 = x.reshape(B, C, H * W)
    logits = jnp.einsum("c,bcs->bs", p["wm"], x2) + p["bm"]
    attn = jax.nn.softmax(logits, axis=-1)
    ctx = jnp.einsum("bcs,bs->bc", x2, attn)
    h = ctx @ p["w1"].T + p["b1"]
    mu = h.mean(-1, keepdims=True)
    var = ((h - mu) ** 2).mean(-1, keepdims=True)
    hn = (h - mu) * jax.lax.rsqrt(var + 1e-5) * p["gamma"] + p["beta"]
    hn = jnp.maximum(hn, 0.0)
    y = hn @ p["w2"].T + p["b2"]
    return x + y[:, :, None, None]


if __name__ == "__main__":
    key = jax.random.PRNGKey(0)
    ch = [4, 8, 8]                              # channel counts of the pyramid levels
    spatial = [(16, 16), (16, 16), (12, 12)]    # last level exercises lane padding (144->256)
    B = 2

    k_params, k_data = jax.random.split(key)
    pkeys = jax.random.split(k_params, 2 * len(ch))
    params_s = [init_level_params(pkeys[2 * i], c) for i, c in enumerate(ch)]
    params_t = [init_level_params(pkeys[2 * i + 1], c) for i, c in enumerate(ch)]

    dkeys = jax.random.split(k_data, 2 * len(ch))
    student_fm = [jax.random.normal(dkeys[2 * i], (B, c) + spatial[i], jnp.float32)
                  for i, c in enumerate(ch)]
    teacher_fm = [jax.random.normal(dkeys[2 * i + 1], (B, c) + spatial[i], jnp.float32)
                  for i, c in enumerate(ch)]

    student_gb, teacher_gb = gc_block_forward(student_fm, teacher_fm, params_s, params_t)
    jax.block_until_ready((student_gb, teacher_gb))

    # sanity check vs. pure-JAX reference
    for i in range(len(ch)):
        ref_s = gc_ref_single(student_fm[i], params_s[i])
        ref_t = gc_ref_single(teacher_fm[i], params_t[i])
        assert jnp.allclose(student_gb[i], ref_s, atol=2e-4, rtol=2e-4), f"student level {i} mismatch"
        assert jnp.allclose(teacher_gb[i], ref_t, atol=2e-4, rtol=2e-4), f"teacher level {i} mismatch"

    # also exercise the HW-tiled online-softmax fallback path and verify it
    forced = gc_apply_single(student_fm[0], params_s[0], force_hw_tile=128)
    jax.block_until_ready(forced)
    assert jnp.allclose(forced, gc_ref_single(student_fm[0], params_s[0]),
                        atol=2e-4, rtol=2e-4), "HW-tiled fallback mismatch"

    print("KERNEL_OK")
</pallas_src>

<mosaic_0001>
module attributes {stable_mosaic.version = 11 : i64} {
  func.func @gc_fused_kernel(%arg0: i32, %arg1: memref<2x4x256xf32, #tpu.memory_space<vmem>>, %arg2: memref<4x1xf32, #tpu.memory_space<vmem>>, %arg3: memref<4x2xf32, #tpu.memory_space<vmem>>, %arg4: memref<1x2xf32, #tpu.memory_space<vmem>>, %arg5: memref<1x2xf32, #tpu.memory_space<vmem>>, %arg6: memref<1x2xf32, #tpu.memory_space<vmem>>, %arg7: memref<2x4xf32, #tpu.memory_space<vmem>>, %arg8: memref<1x4xf32, #tpu.memory_space<vmem>>, %arg9: memref<2x4x256xf32, #tpu.memory_space<vmem>>) attributes {dimension_semantics = [#tpu.dimension_semantics<parallel>], iteration_bounds = array<i64: 1>, scalar_prefetch = 0 : i64, scratch_operands = 0 : i64, tpu.core_type = #tpu.core_type<tc>, window_params = [{transform_indices = @transform_0, window_bounds = array<i64: 2, 4, 256>}, {pipeline_mode = #tpu.pipeline_mode<synchronous>, transform_indices = @transform_1, window_bounds = array<i64: 4, 1>}, {pipeline_mode = #tpu.pipeline_mode<synchronous>, transform_indices = @transform_2, window_bounds = array<i64: 4, 2>}, {pipeline_mode = #tpu.pipeline_mode<synchronous>, transform_indices = @transform_3, window_bounds = array<i64: 1, 2>}, {pipeline_mode = #tpu.pipeline_mode<synchronous>, transform_indices = @transform_4, window_bounds = array<i64: 1, 2>}, {pipeline_mode = #tpu.pipeline_mode<synchronous>, transform_indices = @transform_5, window_bounds = array<i64: 1, 2>}, {pipeline_mode = #tpu.pipeline_mode<synchronous>, transform_indices = @transform_6, window_bounds = array<i64: 2, 4>}, {pipeline_mode = #tpu.pipeline_mode<synchronous>, transform_indices = @transform_7, window_bounds = array<i64: 1, 4>}, {transform_indices = @transform_8, window_bounds = array<i64: 2, 4, 256>}]} {
    %c0 = arith.constant 0 : index
    %c0_0 = arith.constant 0 : index
    %c0_1 = arith.constant 0 : index
    %0 = vector.load %arg1[%c0, %c0_0, %c0_1] : memref<2x4x256xf32, #tpu.memory_space<vmem>>, vector<2x4x256xf32>
    %c0_2 = arith.constant 0 : index
    %c0_3 = arith.constant 0 : index
    %1 = vector.load %arg2[%c0_2, %c0_3] : memref<4x1xf32, #tpu.memory_space<vmem>>, vector<4x1xf32>
    %2 = vector.shape_cast %1 : vector<4x1xf32> to vector<1x4x1xf32>
    %3 = vector.broadcast %2 : vector<1x4x1xf32> to vector<2x4x256xf32>
    %4 = arith.mulf %0, %3 : vector<2x4x256xf32>
    %cst = arith.constant dense<0.000000e+00> : vector<2x256xf32>
    %5 = vector.multi_reduction <add>, %4, %cst [1] : vector<2x4x256xf32> to vector<2x256xf32>
    %cst_4 = arith.constant dense<0xFF800000> : vector<2xf32>
    %6 = vector.multi_reduction <maximumf>, %5, %cst_4 [1] : vector<2x256xf32> to vector<2xf32>
    %7 = vector.shape_cast %6 : vector<2xf32> to vector<2x1xf32>
    %8 = vector.broadcast %7 : vector<2x1xf32> to vector<2x256xf32>
    %9 = arith.subf %5, %8 : vector<2x256xf32>
    %10 = math.exp %9 : vector<2x256xf32>
    %cst_5 = arith.constant dense<0.000000e+00> : vector<2xf32>
    %11 = vector.multi_reduction <add>, %10, %cst_5 [1] : vector<2x256xf32> to vector<2xf32>
    %12 = vector.shape_cast %11 : vector<2xf32> to vector<2x1xf32>
    %13 = vector.shape_cast %10 : vector<2x256xf32> to vector<2x1x256xf32>
    %14 = vector.broadcast %13 : vector<2x1x256xf32> to vector<2x4x256xf32>
    %15 = arith.mulf %0, %14 : vector<2x4x256xf32>
    %cst_6 = arith.constant dense<0.000000e+00> : vector<2x4xf32>
    %16 = vector.multi_reduction <add>, %15, %cst_6 [2] : vector<2x4x256xf32> to vector<2x4xf32>
    %17 = tpu.reciprocal %12 : vector<2x1xf32> -> vector<2x1xf32>
    %18 = vector.broadcast %17 : vector<2x1xf32> to vector<2x4xf32>
    %19 = arith.mulf %16, %18 : vector<2x4xf32>
    %c0_7 = arith.constant 0 : index
    %c0_8 = arith.constant 0 : index
    %20 = vector.load %arg3[%c0_7, %c0_8] : memref<4x2xf32, #tpu.memory_space<vmem>>, vector<4x2xf32>
    %cst_9 = arith.constant dense<0.000000e+00> : vector<2x2xf32>
    %21 = tpu.matmul %19, %20, %cst_9 {dimension_numbers = #tpu.dot_dimension_numbers<[1], [0], [0], [1], [0, 0, 1, 1], [], []>} : vector<2x4xf32>, vector<4x2xf32>, vector<2x2xf32> -> vector<2x2xf32>
    %c0_10 = arith.constant 0 : index
    %c0_11 = arith.constant 0 : index
    %22 = vector.load %arg4[%c0_10, %c0_11] : memref<1x2xf32, #tpu.memory_space<vmem>>, vector<1x2xf32>
    %23 = vector.broadcast %22 : vector<1x2xf32> to vector<2x2xf32>
    %24 = arith.addf %21, %23 : vector<2x2xf32>
    %cst_12 = arith.constant dense<0.000000e+00> : vector<2xf32>
    %25 = vector.multi_reduction <add>, %24, %cst_12 [1] : vector<2x2xf32> to vector<2xf32>
    %26 = vector.shape_cast %25 : vector<2xf32> to vector<2x1xf32>
    %cst_13 = arith.constant 2.000000e+00 : f32
    %27 = vector.broadcast %cst_13 : f32 to vector<2x1xf32>
    %28 = arith.divf %26, %27 : vector<2x1xf32>
    %29 = vector.broadcast %28 : vector<2x1xf32> to vector<2x2xf32>
    %30 = arith.subf %24, %29 : vector<2x2xf32>
    %31 = arith.mulf %30, %30 : vector<2x2xf32>
    %cst_14 = arith.constant dense<0.000000e+00> : vector<2xf32>
    %32 = vector.multi_reduction <add>, %31, %cst_14 [1] : vector<2x2xf32> to vector<2xf32>
    %33 = vector.shape_cast %32 : vector<2xf32> to vector<2x1xf32>
    %cst_15 = arith.constant 2.000000e+00 : f32
    %34 = vector.broadcast %cst_15 : f32 to vector<2x1xf32>
    %35 = arith.divf %33, %34 : vector<2x1xf32>
    %36 = vector.broadcast %28 : vector<2x1xf32> to vector<2x2xf32>
    %37 = arith.subf %24, %36 : vector<2x2xf32>
    %cst_16 = arith.constant 9.99999974E-6 : f32
    %38 = vector.broadcast %cst_16 : f32 to vector<2x1xf32>
    %39 = arith.addf %35, %38 : vector<2x1xf32>
    %40 = math.rsqrt %39 : vector<2x1xf32>
    %41 = vector.broadcast %40 : vector<2x1xf32> to vector<2x2xf32>
    %42 = arith.mulf %37, %41 : vector<2x2xf32>
    %c0_17 = arith.constant 0 : index
    %c0_18 = arith.constant 0 : index
    %43 = vector.load %arg5[%c0_17, %c0_18] : memref<1x2xf32, #tpu.memory_space<vmem>>, vector<1x2xf32>
    %44 = vector.broadcast %43 : vector<1x2xf32> to vector<2x2xf32>
    %45 = arith.mulf %42, %44 : vector<2x2xf32>
    %c0_19 = arith.constant 0 : index
    %c0_20 = arith.constant 0 : index
    %46 = vector.load %arg6[%c0_19, %c0_20] : memref<1x2xf32, #tpu.memory_space<vmem>>, vector<1x2xf32>
    %47 = vector.broadcast %46 : vector<1x2xf32> to vector<2x2xf32>
    %48 = arith.addf %45, %47 : vector<2x2xf32>
    %cst_21 = arith.constant 0.000000e+00 : f32
    %49 = vector.broadcast %cst_21 : f32 to vector<2x2xf32>
    %50 = arith.maximumf %48, %49 : vector<2x2xf32>
    %c0_22 = arith.constant 0 : index
    %c0_23 = arith.constant 0 : index
    %51 = vector.load %arg7[%c0_22, %c0_23] : memref<2x4xf32, #tpu.memory_space<vmem>>, vector<2x4xf32>
    %cst_24 = arith.constant dense<0.000000e+00> : vector<2x4xf32>
    %52 = tpu.matmul %50, %51, %cst_24 {dimension_numbers = #tpu.dot_dimension_numbers<[1], [0], [0], [1], [0, 0, 1, 1], [], []>} : vector<2x2xf32>, vector<2x4xf32>, vector<2x4xf32> -> vector<2x4xf32>
    %c0_25 = arith.constant 0 : index
    %c0_26 = arith.constant 0 : index
    %53 = vector.load %arg8[%c0_25, %c0_26] : memref<1x4xf32, #tpu.memory_space<vmem>>, vector<1x4xf32>
    %54 = vector.broadcast %53 : vector<1x4xf32> to vector<2x4xf32>
    %55 = arith.addf %52, %54 : vector<2x4xf32>
    %56 = vector.shape_cast %55 : vector<2x4xf32> to vector<2x4x1xf32>
    %57 = vector.broadcast %56 : vector<2x4x1xf32> to vector<2x4x256xf32>
    %58 = arith.addf %0, %57 : vector<2x4x256xf32>
    %c0_27 = arith.constant 0 : index
    %c0_28 = arith.constant 0 : index
    %c0_29 = arith.constant 0 : index
    %59 = vector.load %arg9[%c0_27, %c0_28, %c0_29] : memref<2x4x256xf32, #tpu.memory_space<vmem>>, vector<2x4x256xf32>
    tpu.vector_store %arg9[%c0_27, %c0_28, %c0_29], %58 {strides = array<i32>} : memref<2x4x256xf32, #tpu.memory_space<vmem>>, vector<2x4x256xf32>,
    return
  }
  func.func @transform_0(%arg0: i32) -> (i32, i32, i32) {
    %c0_i32 = arith.constant 0 : i32
    %c0_i32_0 = arith.constant 0 : i32
    %c0_i32_1 = arith.constant 0 : i32
    return %arg0, %c0_i32, %c0_i32_0 : i32, i32, i32
  }
  func.func @transform_1(%arg0: i32) -> (i32, i32) {
    %c0_i32 = arith.constant 0 : i32
    %c0_i32_0 = arith.constant 0 : i32
    %c0_i32_1 = arith.constant 0 : i32
    return %c0_i32, %c0_i32_0 : i32, i32
  }
  func.func @transform_2(%arg0: i32) -> (i32, i32) {
    %c0_i32 = arith.constant 0 : i32
    %c0_i32_0 = arith.constant 0 : i32
    %c0_i32_1 = arith.constant 0 : i32
    return %c0_i32, %c0_i32_0 : i32, i32
  }
  func.func @transform_3(%arg0: i32) -> (i32, i32) {
    %c0_i32 = arith.constant 0 : i32
    %c0_i32_0 = arith.constant 0 : i32
    %c0_i32_1 = arith.constant 0 : i32
    return %c0_i32, %c0_i32_0 : i32, i32
  }
  func.func @transform_4(%arg0: i32) -> (i32, i32) {
    %c0_i32 = arith.constant 0 : i32
    %c0_i32_0 = arith.constant 0 : i32
    %c0_i32_1 = arith.constant 0 : i32
    return %c0_i32, %c0_i32_0 : i32, i32
  }
  func.func @transform_5(%arg0: i32) -> (i32, i32) {
    %c0_i32 = arith.constant 0 : i32
    %c0_i32_0 = arith.constant 0 : i32
    %c0_i32_1 = arith.constant 0 : i32
    return %c0_i32, %c0_i32_0 : i32, i32
  }
  func.func @transform_6(%arg0: i32) -> (i32, i32) {
    %c0_i32 = arith.constant 0 : i32
    %c0_i32_0 = arith.constant 0 : i32
    %c0_i32_1 = arith.constant 0 : i32
    return %c0_i32, %c0_i32_0 : i32, i32
  }
  func.func @transform_7(%arg0: i32) -> (i32, i32) {
    %c0_i32 = arith.constant 0 : i32
    %c0_i32_0 = arith.constant 0 : i32
    %c0_i32_1 = arith.constant 0 : i32
    return %c0_i32, %c0_i32_0 : i32, i32
  }
  func.func @transform_8(%arg0: i32) -> (i32, i32, i32) {
    %c0_i32 = arith.constant 0 : i32
    %c0_i32_0 = arith.constant 0 : i32
    %c0_i32_1 = arith.constant 0 : i32
    return %arg0, %c0_i32, %c0_i32_0 : i32, i32, i32
  }
}

</mosaic_0001>

<bundles_post_ra>
// kernel: tpu_custom_call.1
= control target key start
LH: loop header
LB: loop body
LE: loop exit
PB: predicated region body
PF: predicated region fallthrough
CT: control target
= control target key end

     0   :  { %13 = vsyncpa [#allocation3], 0  ;;  %s1048_s0 = inlined_call_operand.hbm [shape: f32[2,4,256], index: 0, kind: input, shape index: {}]   ;;  %s1049_s1 = inlined_call_operand.hbm [shape: f32[4,1], index: 1, kind: input, shape index: {}]   ;;  %s1050_s2 = inlined_call_operand.hbm [shape: f32[4,2], index: 2, kind: input, shape index: {}]   ;;  %s1051_s3 = inlined_call_operand.hbm [shape: f32[1,2], index: 3, kind: input, shape index: {}]   ;;  %s1052_s4 = inlined_call_operand.hbm [shape: f32[1,2], index: 4, kind: input, shape index: {}]   ;;  %s1053_s5 = inlined_call_operand.hbm [shape: f32[1,2], index: 5, kind: input, shape index: {}]   ;;  %s1054_s6 = inlined_call_operand.hbm [shape: f32[2,4], index: 6, kind: input, shape index: {}]   ;;  %s1055_s7 = inlined_call_operand.hbm [shape: f32[1,4], index: 7, kind: input, shape index: {}]   ;;  %s1056_s8 = inlined_call_operand.hbm [shape: f32[2,4,256], index: 8, kind: output, shape index: {}]  }
   0x1   :  { %14 = vsyncpa [#allocation6], 0 }
   0x2   :  { %15 = vsyncpa [#allocation9], 0 }
   0x3   :  { %16 = vsyncpa [#allocation12], 0 }
   0x4   :  { %17 = vsyncpa [#allocation15], 0 }
   0x5   :  { %18 = vsyncpa [#allocation4], 0  ;;  %s817_s27 = smov [#allocation5]   ;;  %s818_s29 = smov [#allocation8]  }
   0x6   :  { %s37_s28 = sshll.u32 %s817_s27, 4  ;;  %s57_s30 = sshll.u32 %s818_s29, 4  ;;  %s38_s28 = int_to_ptr.vmem [resolvable:$true] %s37_s28  ;;  %s58_s30 = int_to_ptr.vmem [resolvable:$true] %s57_s30 }
   0x7   :  { %s607_s11 = scalar_lea.hbm %s1049_s1, 64 }
   0x8   :  { %p608_p0 = scmp.ne.s32.totalorder %s1049_s1, %s607_s11  ;;  %p611_p1 = scmp.lt.u32.totalorder %s607_s11, %s1049_s1 }
   0xa   :  { %p613_p2 = pnand %p611_p1, %p608_p0 }
   0xc   :  { %616 = shalt.err (!%p613_p2)
}
   0xd   :  { %s617_s16 = scalar_lea.vmem %s38_s28, 64  ;;  %p622_p4 = scmp.lt.s32.totalorder %s38_s28, %s38_s28 }
   0xe   :  { %p618_p3 = scmp.ne.s32.totalorder %s38_s28, %s617_s16  ;;  %p623_p5 = scmp.lt.s32.totalorder %s617_s16, %s617_s16 }
  0x10   :  { %p624_p6 = por %p623_p5, %p622_p4 }
  0x12   :  { %p625_p7 = pnand %p624_p6, %p618_p3 }
  0x14   :  { %628 = shalt.err (!%p625_p7)
}
  0x15   :  { %40 = dma.hbm_to_vmem [thread:$0]  %s1049_s1, 64, %s38_s28, [#allocation6]  }
  0x16   :  { %s629_s21 = scalar_lea.hbm %s1051_s3, 16 }
  0x17   :  { %p630_p8 = scmp.ne.s32.totalorder %s1051_s3, %s629_s21  ;;  %p633_p9 = scmp.lt.u32.totalorder %s629_s21, %s1051_s3 }
  0x19   :  { %p635_p10 = pnand %p633_p9, %p630_p8 }
  0x1b   :  { %638 = shalt.err (!%p635_p10)
}
  0x1c   :  { %s639_s26 = scalar_lea.vmem %s58_s30, 16  ;;  %s643_s27 = scalar_lea.vmem %s58_s30, 32 }
  0x1d   :  { %p640_p11 = scmp.ne.s32.totalorder %s58_s30, %s639_s26  ;;  %p644_p12 = scmp.lt.s32.totalorder %s58_s30, %s58_s30 }
  0x1e   :  { %p645_p13 = scmp.lt.s32.totalorder %s643_s27, %s639_s26 }
  0x20   :  { %p646_p0 = por %p645_p13, %p644_p12 }
  0x22   :  { %p647_p1 = pnand %p646_p0, %p640_p11 }
  0x24   :  { %650 = shalt.err (!%p647_p1)
}
  0x25   :  { %60 = dma.hbm_to_vmem [thread:$0]  %s1051_s3, 16, %s58_s30, [#allocation9]  }
  0x26   :  { %s819_s29 = smov [#allocation11]   ;;  %s820_s10 = smov [#allocation2]  }
  0x27   :  { %s77_s9 = sshll.u32 %s819_s29, 4  ;;  %s24_s11 = sshll.u32 %s820_s10, 4  ;;  %s78_s9 = int_to_ptr.vmem [resolvable:$true] %s77_s9  ;;  %s901_s11 = int_to_ptr.vmem [resolvable:$true] %s24_s11 }
  0x28   :  { %s651_s14 = scalar_lea.hbm %s1053_s5, 16 }
  0x29   :  { %p652_p2 = scmp.ne.s32.totalorder %s1053_s5, %s651_s14  ;;  %p655_p3 = scmp.lt.u32.totalorder %s651_s14, %s1053_s5 }
  0x2b   :  { %p657_p4 = pnand %p655_p3, %p652_p2 }
  0x2d   :  { %660 = shalt.err (!%p657_p4)
}
  0x2e   :  { %s661_s3 = scalar_lea.vmem %s78_s9, 16  ;;  %s665_s30 = scalar_lea.vmem %s78_s9, 32 }
  0x2f   :  { %p662_p5 = scmp.ne.s32.totalorder %s78_s9, %s661_s3  ;;  %p666_p6 = scmp.lt.s32.totalorder %s78_s9, %s78_s9 }
  0x30   :  { %p667_p7 = scmp.lt.s32.totalorder %s665_s30, %s661_s3 }
  0x32   :  { %p668_p8 = por %p667_p7, %p666_p6 }
  0x34   :  { %p669_p9 = pnand %p668_p8, %p662_p5 }
  0x36   :  { %672 = shalt.err (!%p669_p9)
}
  0x37   :  { %80 = dma.hbm_to_vmem [thread:$0]  %s1053_s5, 16, %s78_s9, [#allocation12]  }
  0x38   :  { %s673_s23 = scalar_lea.hbm %s1048_s0, 256 }
  0x39   :  { %p674_p10 = scmp.ne.s32.totalorder %s1048_s0, %s673_s23  ;;  %p677_p11 = scmp.lt.u32.totalorder %s673_s23, %s1048_s0 }
  0x3b   :  { %p679_p12 = pnand %p677_p11, %p674_p10 }
  0x3d   :  { %682 = shalt.err (!%p679_p12)
}
  0x3e   :  { %s683_s1 = scalar_lea.vmem %s901_s11, 256  ;;  %p688_p0 = scmp.lt.s32.totalorder %s901_s11, %s901_s11 }
  0x3f   :  { %p684_p13 = scmp.ne.s32.totalorder %s901_s11, %s683_s1  ;;  %p689_p1 = scmp.lt.s32.totalorder %s683_s1, %s683_s1 }
  0x41   :  { %p690_p2 = por %p689_p1, %p688_p0 }
  0x43   :  { %p691_p3 = pnand %p690_p2, %p684_p13 }
  0x45   :  { %694 = shalt.err (!%p691_p3)
}
  0x46   :  { %s821_s5 = smov 128   ;;  %s822_s28 = smov 8  }
  0x47   :  { %30 = dma.hbm_to_vmem [thread:$0]  %s1048_s0, 256, %s901_s11, [#allocation3], %s821_s5, %s821_s5, %s822_s28  }
  0x48   :  { %s823_s10 = smov [#allocation7]   ;;  %s824_s13 = smov [#allocation10]  }
  0x49   :  { %s47_s12 = sshll.u32 %s823_s10, 4  ;;  %s67_s14 = sshll.u32 %s824_s13, 4  ;;  %s48_s12 = int_to_ptr.vmem [resolvable:$true] %s47_s12  ;;  %s68_s14 = int_to_ptr.vmem [resolvable:$true] %s67_s14 }
  0x4a   :  { %s695_s17 = scalar_lea.hbm %s1050_s2, 64 }
  0x4b   :  { %p696_p4 = scmp.ne.s32.totalorder %s1050_s2, %s695_s17  ;;  %p699_p5 = scmp.lt.u32.totalorder %s695_s17, %s1050_s2 }
  0x4d   :  { %p701_p6 = pnand %p699_p5, %p696_p4 }
  0x4f   :  { %704 = shalt.err (!%p701_p6)
}
  0x50   :  { %s705_s0 = scalar_lea.vmem %s48_s12, 64  ;;  %p710_p8 = scmp.lt.s32.totalorder %s48_s12, %s48_s12 }
  0x51   :  { %p706_p7 = scmp.ne.s32.totalorder %s48_s12, %s705_s0  ;;  %p711_p9 = scmp.lt.s32.totalorder %s705_s0, %s705_s0 }
  0x53   :  { %p712_p10 = por %p711_p9, %p710_p8 }
  0x55   :  { %p713_p11 = pnand %p712_p10, %p706_p7 }
  0x57   :  { %716 = shalt.err (!%p713_p11)
}
  0x58   :  { %50 = dma.hbm_to_vmem [thread:$0]  %s1050_s2, 64, %s48_s12, [#allocation6]  }
  0x59   :  { %s717_s23 = scalar_lea.hbm %s1052_s4, 16 }
  0x5a   :  { %p718_p12 = scmp.ne.s32.totalorder %s1052_s4, %s717_s23  ;;  %p721_p13 = scmp.lt.u32.totalorder %s717_s23, %s1052_s4 }
  0x5c   :  { %p723_p0 = pnand %p721_p13, %p718_p12 }
  0x5e   :  { %726 = shalt.err (!%p723_p0)
}
  0x5f   :  { %s727_s1 = scalar_lea.vmem %s68_s14, 16  ;;  %s731_s29 = scalar_lea.vmem %s68_s14, 32 }
  0x60   :  { %p728_p1 = scmp.ne.s32.totalorder %s68_s14, %s727_s1  ;;  %p732_p2 = scmp.lt.s32.totalorder %s68_s14, %s68_s14 }
  0x61   :  { %p733_p3 = scmp.lt.s32.totalorder %s731_s29, %s727_s1 }
  0x63   :  { %p734_p4 = por %p733_p3, %p732_p2 }
  0x65   :  { %p735_p5 = pnand %p734_p4, %p728_p1 }
  0x67   :  { %738 = shalt.err (!%p735_p5)
}
  0x68   :  { %70 = dma.hbm_to_vmem [thread:$0]  %s1052_s4, 16, %s68_s14, [#allocation9]  }
  0x69   :  { %s825_s10 = smov [#allocation13]   ;;  %s826_s13 = smov [#allocation14]  }
  0x6a   :  { %s87_s12 = sshll.u32 %s825_s10, 4  ;;  %s97_s15 = sshll.u32 %s826_s13, 4  ;;  %s88_s12 = int_to_ptr.vmem [resolvable:$true] %s87_s12  ;;  %s98_s15 = int_to_ptr.vmem [resolvable:$true] %s97_s15 }
  0x6b   :  { %s739_s18 = scalar_lea.hbm %s1054_s6, 32 }
  0x6c   :  { %p740_p6 = scmp.ne.s32.totalorder %s1054_s6, %s739_s18  ;;  %p743_p7 = scmp.lt.u32.totalorder %s739_s18, %s1054_s6 }
  0x6e   :  { %p745_p8 = pnand %p743_p7, %p740_p6 }
  0x70   :  { %748 = shalt.err (!%p745_p8)
}
  0x71   :  { %s749_s4 = scalar_lea.vmem %s88_s12, 32  ;;  %p754_p10 = scmp.lt.s32.totalorder %s88_s12, %s88_s12 }
  0x72   :  { %p750_p9 = scmp.ne.s32.totalorder %s88_s12, %s749_s4  ;;  %p755_p11 = scmp.lt.s32.totalorder %s749_s4, %s749_s4 }
  0x74   :  { %p756_p12 = por %p755_p11, %p754_p10 }
  0x76   :  { %p757_p13 = pnand %p756_p12, %p750_p9 }
  0x78   :  { %760 = shalt.err (!%p757_p13)
}
  0x79   :  { %90 = dma.hbm_to_vmem [thread:$0]  %s1054_s6, 32, %s88_s12, [#allocation12]  }
  0x7a   :  { %s761_s22 = scalar_lea.hbm %s1055_s7, 16 }
  0x7b   :  { %p762_p0 = scmp.ne.s32.totalorder %s1055_s7, %s761_s22  ;;  %p765_p1 = scmp.lt.u32.totalorder %s761_s22, %s1055_s7 }
  0x7d   :  { %p767_p2 = pnand %p765_p1, %p762_p0 }
  0x7f   :  { %770 = shalt.err (!%p767_p2)
}
  0x80   :  { %s771_s27 = scalar_lea.vmem %s98_s15, 16  ;;  %s775_s1 = scalar_lea.vmem %s98_s15, 32 }
  0x81   :  { %p772_p3 = scmp.ne.s32.totalorder %s98_s15, %s771_s27  ;;  %p776_p4 = scmp.lt.s32.totalorder %s98_s15, %s98_s15 }
  0x82   :  { %p777_p5 = scmp.lt.s32.totalorder %s775_s1, %s771_s27 }
  0x84   :  { %p778_p6 = por %p777_p5, %p776_p4 }
  0x86   :  { %p779_p7 = pnand %p778_p6, %p772_p3 }
  0x88   :  { %782 = shalt.err (!%p779_p7)
}
  0x89   :  { %100 = dma.hbm_to_vmem [thread:$0]  %s1055_s7, 16, %s98_s15, [#allocation15]  }
  0x8a   :  { %805 = dma.done.wait [#allocation3], 256  }
  0x8b   :  { %806 = vsyncadd [#allocation3], 4294967040 }
  0x8c   :  { %807 = dma.done.wait [#allocation6], 128  }
  0x8d   :  { %808 = vsyncadd [#allocation6], 4294967168 }
  0x8e   :  { %809 = dma.done.wait [#allocation9], 32  }
  0x8f   :  { %810 = vsyncadd [#allocation9], 4294967264 }
  0x90   :  { %811 = dma.done.wait [#allocation12], 48  }
  0x91   :  { %812 = vsyncadd [#allocation12], 4294967248 }
  0x92   :  { %813 = dma.done.wait [#allocation15], 16  }
  0x93   :  { %814 = vsyncadd [#allocation15], 4294967280  ;;  %v827_v0 = vmov 0   ;;  %v127_v1 = vld [vmem:[#allocation5] sm:$0xf]  ;;  %v135_v4 = vlaneseq  ;;  %v989_v9 = vld [vmem:[#allocation2] sm:$0xff] }
  0x94   :  { %593 = vset.pattern.permute.xlu0 %v827_v0  ;;  %594 = vset.pattern.permute.xlu1 %v827_v0  ;;  %v828_v2 = vmov 839922192   ;;  %v991_v10 = vld [vmem:[#allocation2 + $0x8] sm:$0xff]  ;;  %vm148_vm0 = vcmask 1043456   ;;  %vm181_vm1 = vcmask 1041409   ;;  %vm186_vm2 = vcmask 1041408  }
  0x95   :  { %130 = vperm.xlu0 %593, %v127_v1   ;;  %v133_v3 = vunpack.c.l.s4 %v828_v2  ;;  %v984_v6 = vshrl.u32 %v135_v4, 7  ;;  %vm830_vm3 = vmmov 0   ;;  %vm306_vm4 = vcmask 31744   ;;  %s831_s7 = smov [#allocation16]  }
  0x96   :  { %vm382_vm5 = vcmask 9216   ;;  %vm422_vm6 = vcmask 15360   ;;  %s540_s2 = sshll.u32 %s831_s7, 4  ;;  %s541_s2 = int_to_ptr.vmem [resolvable:$true] %s540_s2 }
  0x97   :  { %v134_v5 = vunpack.c.0.s8 %v133_v3  ;;  %v1005_v59 = vsub.s32 0, %v984_v6  ;;  %s783_s9 = scalar_lea.vmem %s541_s2, 256  ;;  %p788_p9 = scmp.lt.s32.totalorder %s541_s2, %s541_s2 }
  0x98   :  { %p784_p8 = scmp.ne.s32.totalorder %s541_s2, %s783_s9  ;;  %p789_p10 = scmp.lt.s32.totalorder %s783_s9, %s783_s9 }
  0x99   :  { %v987_v7 = vsub.s32 %v134_v5, %v984_v6 }
  0x9a   :  { %p790_p11 = por %p789_p10, %p788_p9 }
  0x9c   :  { %p791_p12 = pnand %p790_p11, %p784_p8 }
 0x114   :  { %v131_v8 = vpop.permute.xlu0 %130 }
 0x115   :  { %v138_v11 = vrot.slane %v131_v8, %v987_v7 }
 0x117   :  { %v140_v12 = vmul.f32 %v138_v11, %v989_v9  ;;  %v141_v13 = vmul.f32 %v138_v11, %v991_v10 }
 0x119   :  { %v144_v14 = vcombine.high %v140_v12, %v140_v12  ;;  %v145_v15 = vcombine.high %v141_v13, %v141_v13  ;;  %v149_v16 = vsel %vm148_vm0, %v140_v12, 0.0  ;;  %v163_v17 = vsel %vm148_vm0, %v141_v13, 0.0 }
 0x11a   :  { %v150_v18 = vrot.slane %v149_v16, 4  ;;  %v164_v19 = vrot.slane %v163_v17, 4 }
 0x11b   :  { %v156_v20 = vsel %vm148_vm0, %v144_v14, 0.0  ;;  %v170_v21 = vsel %vm148_vm0, %v145_v15, 0.0 }
 0x11c   :  { %v151_v22 = vadd.f32 %v150_v18, %v149_v16  ;;  %v157_v23 = vrot.slane %v156_v20, 4  ;;  %v165_v24 = vadd.f32 %v164_v19, %v163_v17  ;;  %v171_v25 = vrot.slane %v170_v21, 4 }
 0x11e   :  { %v152_v26 = vrot.slane %v151_v22, 2  ;;  %v158_v27 = vadd.f32 %v157_v23, %v156_v20  ;;  %v166_v28 = vrot.slane %v165_v24, 2  ;;  %v172_v29 = vadd.f32 %v171_v25, %v170_v21 }
 0x120   :  { %v153_v30 = vadd.f32 %v152_v26, %v151_v22  ;;  %v159_v31 = vrot.slane %v158_v27, 2  ;;  %v167_v32 = vadd.f32 %v166_v28, %v165_v24  ;;  %v173_v33 = vrot.slane %v172_v29, 2 }
 0x122   :  { %v154_v34 = vrot.slane %v153_v30, 1  ;;  %v160_v35 = vadd.f32 %v159_v31, %v158_v27  ;;  %v168_v36 = vrot.slane %v167_v32, 1  ;;  %v174_v37 = vadd.f32 %v173_v33, %v172_v29 }
 0x123   :  { %v273_v29 = vsub.s32 1, %v984_v6 }
 0x124   :  { %v155_v38 = vadd.f32 %v154_v34, %v153_v30  ;;  %v161_v39 = vrot.slane %v160_v35, 1  ;;  %v169_v40 = vadd.f32 %v168_v36, %v167_v32  ;;  %v175_v41 = vrot.slane %v174_v37, 1 }
 0x126   :  { %v162_v42 = vadd.f32 %v161_v39, %v160_v35  ;;  %v176_v43 = vadd.f32 %v175_v41, %v174_v37  ;;  %v182_v44 = vsel %vm181_vm1, %v169_v40, %v155_v38  ;;  %v279_v37 = vld [vmem:[#allocation7] sm:$0xf]  ;;  %v296_v39 = vand.u32 127, %v135_v4 }
 0x127   :  { %v187_v46 = vsel %vm186_vm2, %v182_v44, -inf }
 0x128   :  { %v183_v45 = vsel %vm181_vm1, %v176_v43, %v162_v42  ;;  %v299_v41 = vsub.s32 %v296_v39, %v984_v6  ;;  %v414_v6 = vld [vmem:[#allocation13] sm:$0x3] }
 0x129   :  { %v188_v47 = vsel %vm186_vm2, %v183_v45, -inf }
 0x12a   :  { %v189_v48 = vmax.f32 %v187_v46, %v188_v47  ;;  %v556_v46 = vld [vmem:[#allocation8] ss:$0 sm:$0xff] }
 0x12c   :  { %190 = vmax.xlane.f32.xlu0 %v189_v48 }
 0x1b9   :  { %v191_v49 = vpop.xlane.xlu0 %190 }
 0x1ba   :  { %v193_v50 = vrot.slane %v191_v49, 1  ;;  %v196_v51 = vsub.f32 %v155_v38, %v191_v49  ;;  %v197_v52 = vsub.f32 %v162_v42, %v191_v49  ;;  %v829_v38 = vmov 0.0  }
 0x1bb   :  { %568 = vmatprep.subr.mxu0 %v829_v38  ;;  %570 = vmatprep.mubr.msk.f32.mxu0 %vm830_vm3, %v829_v38 }
 0x1bc   :  { %v198_v53 = vsub.f32 %v169_v40, %v193_v50  ;;  %v199_v54 = vsub.f32 %v176_v43, %v193_v50  ;;  %v200_v55 = vmul.f32 1.442695, %v196_v51  ;;  %v202_v56 = vmul.f32 1.442695, %v197_v52  ;;  %569 = vmatpush3.msk.msra.mxu0 %vm148_vm0, %v279_v37  ;;  %573 = vmatprep.subr.mxu1 %v829_v38 }
 0x1bd   :  { %575 = vmatprep.mubr.msk.f32.mxu1 %vm830_vm3, %v829_v38  ;;  %574 = vmatpush3.msk.msra.mxu1 %vm186_vm2, %v414_v6 }
 0x1be   :  { %595 = vpow2.f32 %v200_v55  ;;  %v204_v57 = vmul.f32 1.442695, %v198_v53  ;;  %v206_v58 = vmul.f32 1.442695, %v199_v54 }
 0x1bf   :  { %597 = vpow2.f32 %v202_v56 }
 0x1c0   :  { %599 = vpow2.f32 %v204_v57 }
 0x1c1   :  { %601 = vpow2.f32 %v206_v58 }
 0x1c8   :  { %v596_v60 = vpop.eup %595 }
 0x1c9   :  { %v598_v61 = vpop.eup %597  ;;  %v226_v62 = vrot.slane %v596_v60, %v1005_v59 }
 0x1ca   :  { %v600_v63 = vpop.eup %599  ;;  %v230_v0 = vrot.slane %v598_v61, %v1005_v59 }
 0x1cb   :  { %v602_v1 = vpop.eup %601  ;;  %v212_v2 = vrot.slane %v600_v63, 7  ;;  %v234_v3 = vrot.slane %v600_v63, %v1005_v59 }
 0x1cc   :  { %v214_v5 = vrot.slane %v602_v1, 7  ;;  %v243_v8 = vcombine.low %v226_v62, %v230_v0  ;;  %v238_v11 = vrot.slane %v602_v1, %v1005_v59  ;;  %v560_v62 = vld [vmem:[#allocation11] ss:$0 sm:$0xff] }
 0x1cd   :  { %v213_v12 = vsel %vm181_vm1, %v212_v2, %v596_v60  ;;  %v559_v60 = vld [vmem:[#allocation10] ss:$0 sm:$0xff]  ;;  %v561_v2 = vld [vmem:[#allocation14] ss:$0 sm:$0xff] }
 0x1ce   :  { %v215_v13 = vsel %vm181_vm1, %v214_v5, %v598_v61  ;;  %v218_v14 = vsel %vm186_vm2, %v213_v12, 0.0  ;;  %v247_v15 = vmul.f32 %v243_v8, %v989_v9  ;;  %v244_v16 = vcombine.low %v234_v3, %v238_v11 }
 0x1cf   :  { %v219_v17 = vsel %vm186_vm2, %v215_v13, 0.0 }
 0x1d0   :  { %v220_v18 = vadd.f32 %v219_v17, %v218_v14  ;;  %v251_v19 = vcombine.high %v247_v15, %v247_v15  ;;  %v248_v20 = vmul.f32 %v244_v16, %v991_v10  ;;  %v255_v21 = vsel %vm148_vm0, %v247_v15, 0.0 }
 0x1d2   :  { %221 = vadd.xlane.f32.xlu1 %v220_v18  ;;  %v256_v22 = vsel %vm148_vm0, %v251_v19, 0.0  ;;  %v252_v23 = vcombine.high %v248_v20, %v248_v20  ;;  %v260_v26 = vsel %vm148_vm0, %v248_v20, 0.0 }
 0x1d3   :  { %v257_v24 = vadd.f32 %v256_v22, %v255_v21 }
 0x1d4   :  { %v261_v25 = vsel %vm148_vm0, %v252_v23, 0.0 }
 0x1d5   :  { %v262_v27 = vadd.f32 %v261_v25, %v260_v26 }
 0x1d6   :  { %258 = vadd.xlane.f32.xlu1 %v257_v24 }
 0x1da   :  { %263 = vadd.xlane.f32.xlu1 %v262_v27 }
 0x25f   :  { %v222_v28 = vpop.xlane.xlu1 %221 }
 0x260   :  { %603 = vrcp.f32 %v222_v28 }
 0x263   :  { %v259_v31 = vpop.xlane.xlu1 %258 }
 0x267   :  { %v264_v35 = vpop.xlane.xlu1 %263 }
 0x26a   :  { %v604_v30 = vpop.eup %603 }
 0x26b   :  { %v270_v32 = vrot.slane %v604_v30, %v1005_v59  ;;  %v274_v34 = vrot.slane %v604_v30, %v273_v29 }
 0x26d   :  { %v277_v33 = vmul.f32 %v270_v32, %v259_v31  ;;  %v278_v36 = vmul.f32 %v274_v34, %v264_v35 }
 0x26f   :  { %290 = vperm.xlu1 %594, %v277_v33  }
 0x273   :  { %293 = vperm.xlu1 %594, %v278_v36  }
 0x2ee   :  { %v291_v40 = vpop.permute.xlu1 %290 }
 0x2ef   :  { %v300_v43 = vrot.slane %v291_v40, %v299_v41 }
 0x2f2   :  { %v294_v42 = vpop.permute.xlu1 %293 }
 0x2f3   :  { %v304_v44 = vrot.slane %v294_v42, %v299_v41 }
 0x2f5   :  { %v305_v45 = vsel %vm181_vm1, %v304_v44, %v300_v43 }
 0x2f6   :  { %571 = vmatmul.mubr.msk.f32.vlgmr.msra.gmra.mrb[0].mxu0 %vm306_vm4, %v305_v45 }
 0x3c9   :  { %v378_v47 = vpop.f32.mrb[0].mxu0 }
 0x3ca   :  { %v379_v48 = vadd.f32 %v556_v46, %v378_v47  ;;  %v572_v49 = vpop.f32.mrb[1].mxu0 }
 0x3cc   :  { %v383_v50 = vsel %vm382_vm5, %v379_v48, 0.0 }
 0x3cd   :  { %384 = vadd.xlane.f32.xlu1 %v383_v50 }
 0x45a   :  { %v385_v51 = vpop.xlane.xlu1 %384 }
 0x45b   :  { %v387_v52 = vmul.f32 0.5, %v385_v51 }
 0x45d   :  { %v388_v4 = vsub.f32 %v379_v48, %v387_v52 }
 0x45f   :  { %v389_v53 = vmul.f32 %v388_v4, %v388_v4 }
 0x461   :  { %v390_v54 = vsel %vm382_vm5, %v389_v53, 0.0 }
 0x462   :  { %391 = vadd.xlane.f32.xlu0 %v390_v54 }
 0x4ef   :  { %v392_v55 = vpop.xlane.xlu0 %391 }
 0x4f0   :  { %v393_v56 = vmul.f32 0.5, %v392_v55 }
 0x4f2   :  { %v394_v57 = vadd.f32 1e-05, %v393_v56 }
 0x4f4   :  { %605 = vrsqrt.f32 %v394_v57 }
 0x4fe   :  { %v606_v58 = vpop.eup %605 }
 0x4ff   :  { %v396_v61 = vmul.f32 %v606_v58, %v388_v4 }
 0x501   :  { %v404_v63 = vmul.f32 %v559_v60, %v396_v61 }
 0x503   :  { %v412_v0 = vadd.f32 %v560_v62, %v404_v63 }
 0x505   :  { %v413_v1 = vmax.f32 %v412_v0, 0.0 }
 0x507   :  { %576 = vmatmul.mubr.msk.f32.vlgmr.msra.gmra.mrb[0].mxu1 %vm422_vm6, %v413_v1 }
 0x5da   :  { %v495_v3 = vpop.f32.mrb[0].mxu1 }
 0x5db   :  { %v496_v5 = vadd.f32 %v561_v2, %v495_v3  ;;  %v577_v8 = vpop.f32.mrb[1].mxu1 }
 0x5dd   :  { %v502_v11 = vrot.slane %v496_v5, %v1005_v59  ;;  %v509_v12 = vrot.slane %v496_v5, %v273_v29 }
 0x5df   :  { %504 = vbcast.lane.b32.xlu0 %v502_v11, 256 }
 0x5e3   :  { %511 = vbcast.lane.b32.xlu0 %v509_v12, 256 }
 0x651   :  { %v505_v13 = vpop.permute.xlu0 %504 }
 0x652   :  { %v521_v14 = vrot.slane %v505_v13, %v987_v7 }
 0x654   :  { %v531_v15 = vadd.f32 %v521_v14, %v989_v9 }
 0x655   :  { %v512_v16 = vpop.permute.xlu0 %511 }
 0x656   :  { %533 = vst [vmem:[#allocation16] sm:$0xff] %v531_v15  ;;  %v528_v17 = vrot.slane %v512_v16, %v987_v7 }
 0x658   :  { %v532_v18 = vadd.f32 %v528_v17, %v991_v10 }
 0x65a   :  { %534 = vst [vmem:[#allocation16 + $0x8] sm:$0xff] %v532_v18 }
 0x65b   :  { %794 = shalt.err (!%p791_p12)
}
 0x65c   :  { %s795_s13 = scalar_lea.hbm %s1056_s8, 256 }
 0x65d   :  { %p796_p13 = scmp.ne.s32.totalorder %s1056_s8, %s795_s13  ;;  %p799_p0 = scmp.lt.u32.totalorder %s795_s13, %s1056_s8 }
 0x65f   :  { %p801_p1 = pnand %p799_p0, %p796_p13 }
 0x661   :  { %804 = shalt.err (!%p801_p1)
}
 0x662   :  { %546 = dma.vmem_to_hbm [thread:$0]  %s541_s2, 256, %s1056_s8, [#allocation4], %s821_s5, %s821_s5, %s822_s28  }
 0x663   :  { %815 = dma.done.wait [#allocation4], 256  }
 0x664   :  { %816 = vsyncadd [#allocation4], 4294967040 }
 0x665   :  { %550 = vsyncpa [#allocation3], 1 }
 0x666   :  { %551 = vsyncpa [#allocation6], 1 }
 0x667   :  { %552 = vsyncpa [#allocation9], 1 }
 0x668   :  { %553 = vsyncpa [#allocation12], 1 }
 0x669   :  { %554 = vsyncpa [#allocation15], 1 }
 0x66a   :  { %555 = vsyncpa [#allocation4], 1 }

</bundles_post_ra>
